<compile_context>
chip_gen: v7x
topology: tpu7x:2x2x1
jax: 0.10.0
libtpu: 0.0.40
codegen_flags: <defaults>
</compile_context>

<pallas_src>
import jax
import jax.numpy as jnp
from jax.experimental import pallas as pl
from jax.experimental.pallas import tpu as pltpu


# --------------------------------------------------------------------------- #
# Single-instance path: (K, E) -> (1, E), grid-tiled with f32 accumulator.
# --------------------------------------------------------------------------- #
def _rowsum_accum_kernel(x_ref, out_ref, acc_ref):
    """grid = (E_tiles 'parallel', K_tiles 'arbitrary').

    Accumulates sum_k x[k, :] into a resident (1, tile_e) f32 scratch and
    stores (with cast) on the last K step.
    """
    k = pl.program_id(1)

    @pl.when(k == 0)
    def _():
        acc_ref[...] = jnp.zeros_like(acc_ref)

    acc_ref[...] += jnp.sum(x_ref[...], axis=0, keepdims=True, dtype=jnp.float32)

    @pl.when(k == pl.num_programs(1) - 1)
    def _():
        out_ref[...] = acc_ref[...].astype(out_ref.dtype)


def _pick_tile(dim, pref, align):
    """Largest multiple of `align` that is <= `pref` and divides `dim`;
    falls back to the full dim (a full-extent block is always legal)."""
    if dim <= pref:
        return dim
    t = (pref // align) * align
    while t >= align:
        if dim % t == 0:
            return t
        t -= align
    return dim


def attention_forward(x, fc_weight=None, fc_bias=None, context=None,
                      *, tile_k_pref=512, tile_e_pref=1024):
    """Faithful single-instance forward.  x: (K, E) -> (1, E).

    fc_weight / fc_bias / context are accepted for interface parity with the
    PyTorch module but are mathematically irrelevant to its output (softmax
    over a singleton axis), so they are neither transferred nor computed on.
    For graphs where this op sits next to other XLA ops, a plain
    `jnp.sum(x, axis=0, keepdims=True)` fuses better than any custom call.
    """
    del fc_weight, fc_bias, context  # dead parameters (see header comment)
    K, E = x.shape
    tile_k = _pick_tile(K, tile_k_pref, 8)      # sublane-aligned or full K
    tile_e = _pick_tile(E, tile_e_pref, 128)    # lane-aligned or full E
    grid = (E // tile_e, K // tile_k)           # reduction axis (K) last
    return pl.pallas_call(
        _rowsum_accum_kernel,
        out_shape=jax.ShapeDtypeStruct((1, E), x.dtype),
        grid=grid,
        in_specs=[pl.BlockSpec((tile_k, tile_e), lambda e, k: (k, e))],
        out_specs=pl.BlockSpec((1, tile_e), lambda e, k: (0, e)),
        scratch_shapes=[pltpu.VMEM((1, tile_e), jnp.float32)],
        compiler_params=pltpu.CompilerParams(
            dimension_semantics=("parallel", "arbitrary")),
    )(x)


# --------------------------------------------------------------------------- #
# Batched path: (B, K, E) -> (B, E).  This is where the per-step overhead gets
# amortized; block_b is derived from the HBM/VMEM budget, not hard-coded.
# --------------------------------------------------------------------------- #
def _rowsum_batched_kernel(x_ref, out_ref):
    # x_ref: (block_b, K, E) -> out_ref: (block_b, E); reduce over K (sublanes),
    # accumulate in f32, cast at the lane-dense store.
    out_ref[...] = jnp.sum(x_ref[...], axis=1, dtype=jnp.float32).astype(out_ref.dtype)


def _choose_block_b(B, K, E, itemsize, *, target_tile_bytes=4 << 20, min_steps=4):
    """Pick block_b:
      * divides B and is a multiple of 8 (sublane-aligned output store),
      * input tile (block_b*K*E*itemsize) stays under `target_tile_bytes`
        (double-buffered footprint then fits every generation's scoped VMEM),
      * prefer >= `min_steps` grid steps (pipelining) and an even step count
        (even split across v7x's 2 TensorCores).
    """
    per_row = max(1, K * E * itemsize)
    cands = [d for d in range(8, B + 1, 8) if B % d == 0] or [B]
    fitting = [d for d in cands if d * per_row <= target_tile_bytes] or [min(cands)]
    good = [d for d in fitting if (B // d) >= min_steps and (B // d) % 2 == 0]
    if good:
        return max(good)
    even = [d for d in fitting if (B // d) >= 2 and (B // d) % 2 == 0]
    if even:
        return max(even)
    return max(fitting)


def attention_forward_batched(x, *, block_b=None, target_tile_bytes=4 << 20):
    """B independent Attention forwards in one call.  x: (B, K, E) -> (B, E)."""
    B, K, E = x.shape
    itemsize = jnp.dtype(x.dtype).itemsize
    if block_b is None:
        block_b = _choose_block_b(B, K, E, itemsize,
                                  target_tile_bytes=target_tile_bytes)
    assert B % block_b == 0, (B, block_b)  # ragged B: pad host-side first

    # Explicit VMEM budget: double-buffered in/out tiles + headroom, clamped so
    # it is legal on every generation (>= v5e's 16 MiB default, < v7x's 32 MiB
    # default scoped / 64 MiB physical).
    in_tile = block_b * K * E * itemsize
    out_tile = block_b * E * itemsize
    vmem_limit = int(min(max(2 * (in_tile + out_tile) + (2 << 20), 16 << 20),
                         30 << 20))

    return pl.pallas_call(
        _rowsum_batched_kernel,
        out_shape=jax.ShapeDtypeStruct((B, E), x.dtype),
        grid=(B // block_b,),
        in_specs=[pl.BlockSpec((block_b, K, E), lambda b: (b, 0, 0))],
        out_specs=pl.BlockSpec((block_b, E), lambda b: (b, 0)),
        compiler_params=pltpu.CompilerParams(
            # batch axis is independent -> shard across the 2 TCs on v7x
            dimension_semantics=("parallel",),
            vmem_limit_bytes=vmem_limit),
    )(x)


# --------------------------------------------------------------------------- #
# Literal transcription of the PyTorch forward (full, dead-compute path).
# --------------------------------------------------------------------------- #
def attention_reference(x, fc_weight, fc_bias, context):
    o = jnp.tanh(x @ fc_weight.T + fc_bias)                        # (K, A)
    s = context @ o.T                                              # (1, K)
    a = jax.nn.softmax(s, axis=0)                                  # size-1 axis -> ones
    return jnp.matmul(a, x, precision=jax.lax.Precision.HIGHEST)   # (1, E)


if __name__ == "__main__":
    K, EMB_DIM, ATTN_EMB_DIM, B = 8, 128, 16, 16

    key = jax.random.PRNGKey(0)
    k_x, k_w, k_b, k_ctx, k_xb = jax.random.split(key, 5)

    x = jax.random.normal(k_x, (K, EMB_DIM), dtype=jnp.float32)
    # parameters matching nn.Linear(emb_dim, attn_emb_dim) and the (1, A) context
    fc_weight = jax.random.normal(k_w, (ATTN_EMB_DIM, EMB_DIM), jnp.float32) * 0.1
    fc_bias = jax.random.normal(k_b, (ATTN_EMB_DIM,), jnp.float32) * 0.1
    context = jax.random.normal(k_ctx, (1, ATTN_EMB_DIM), jnp.float32)

    # ---- single-instance (module-faithful) path ------------------------------
    out = jax.block_until_ready(attention_forward(x, fc_weight, fc_bias, context))
    ref = attention_reference(x, fc_weight, fc_bias, context)
    assert out.shape == (1, EMB_DIM), out.shape
    assert jnp.allclose(out, ref, atol=1e-5, rtol=1e-5)

    # ---- batched path: B problems, one lane-dense grid-tiled call ------------
    xb = jax.random.normal(k_xb, (B, K, EMB_DIM), dtype=jnp.float32)
    outb = jax.block_until_ready(attention_forward_batched(xb))
    refb = jax.vmap(
        lambda xi: attention_reference(xi, fc_weight, fc_bias, context)[0])(xb)
    assert outb.shape == (B, EMB_DIM), outb.shape
    assert jnp.allclose(outb, refb, atol=1e-5, rtol=1e-5)

    # ---- bf16 input: halves HBM traffic, f32 accumulation preserved ----------
    outb_bf16 = jax.block_until_ready(
        attention_forward_batched(xb.astype(jnp.bfloat16)))
    assert outb_bf16.shape == (B, EMB_DIM)
    assert jnp.allclose(outb_bf16.astype(jnp.float32), refb, atol=5e-2, rtol=5e-2)

    print("KERNEL_OK")
</pallas_src>

<mosaic_0001>
module attributes {stable_mosaic.version = 11 : i64} {
  func.func @_rowsum_accum_kernel(%arg0: i32, %arg1: i32, %arg2: memref<8x128xf32, #tpu.memory_space<vmem>>, %arg3: memref<1x128xf32, #tpu.memory_space<vmem>>, %arg4: memref<1x128xf32, #tpu.memory_space<vmem>>) attributes {dimension_semantics = [#tpu.dimension_semantics<parallel>, #tpu.dimension_semantics<arbitrary>], iteration_bounds = array<i64: 1, 1>, scalar_prefetch = 0 : i64, scratch_operands = 1 : i64, tpu.core_type = #tpu.core_type<tc>, window_params = [{transform_indices = @transform_0, window_bounds = array<i64: 8, 128>}, {transform_indices = @transform_1, window_bounds = array<i64: 1, 128>}]} {
    %c0_i32 = arith.constant 0 : i32
    %0 = arith.cmpi eq, %arg1, %c0_i32 : i32
    %1 = arith.extui %0 : i1 to i32
    %c0_i32_0 = arith.constant 0 : i32
    %2 = arith.cmpi ne, %1, %c0_i32_0 : i32
    scf.if %2 {
      %cst_8 = arith.constant 0.000000e+00 : f32
      %12 = vector.broadcast %cst_8 : f32 to vector<1x128xf32>
      %c0_9 = arith.constant 0 : index
      %c0_10 = arith.constant 0 : index
      %13 = vector.load %arg4[%c0_9, %c0_10] : memref<1x128xf32, #tpu.memory_space<vmem>>, vector<1x128xf32>
      tpu.vector_store %arg4[%c0_9, %c0_10], %12 {strides = array<i32>} : memref<1x128xf32, #tpu.memory_space<vmem>>, vector<1x128xf32>,
    } else {
    }
    %c0 = arith.constant 0 : index
    %c0_1 = arith.constant 0 : index
    %3 = vector.load %arg4[%c0, %c0_1] : memref<1x128xf32, #tpu.memory_space<vmem>>, vector<1x128xf32>
    %c0_2 = arith.constant 0 : index
    %c0_3 = arith.constant 0 : index
    %4 = vector.load %arg2[%c0_2, %c0_3] : memref<8x128xf32, #tpu.memory_space<vmem>>, vector<8x128xf32>
    %cst = arith.constant dense<0.000000e+00> : vector<128xf32>
    %5 = vector.multi_reduction <add>, %4, %cst [0] : vector<8x128xf32> to vector<128xf32>
    %6 = vector.shape_cast %5 : vector<128xf32> to vector<1x128xf32>
    %7 = arith.addf %3, %6 : vector<1x128xf32>
    %c0_4 = arith.constant 0 : index
    %c0_5 = arith.constant 0 : index
    %8 = vector.load %arg4[%c0_4, %c0_5] : memref<1x128xf32, #tpu.memory_space<vmem>>, vector<1x128xf32>
    tpu.vector_store %arg4[%c0_4, %c0_5], %7 {strides = array<i32>} : memref<1x128xf32, #tpu.memory_space<vmem>>, vector<1x128xf32>,
    %c0_i32_6 = arith.constant 0 : i32
    %9 = arith.cmpi eq, %arg1, %c0_i32_6 : i32
    %10 = arith.extui %9 : i1 to i32
    %c0_i32_7 = arith.constant 0 : i32
    %11 = arith.cmpi ne, %10, %c0_i32_7 : i32
    scf.if %11 {
      %c0_8 = arith.constant 0 : index
      %c0_9 = arith.constant 0 : index
      %12 = vector.load %arg4[%c0_8, %c0_9] : memref<1x128xf32, #tpu.memory_space<vmem>>, vector<1x128xf32>
      %c0_10 = arith.constant 0 : index
      %c0_11 = arith.constant 0 : index
      %13 = vector.load %arg3[%c0_10, %c0_11] : memref<1x128xf32, #tpu.memory_space<vmem>>, vector<1x128xf32>
      tpu.vector_store %arg3[%c0_10, %c0_11], %12 {strides = array<i32>} : memref<1x128xf32, #tpu.memory_space<vmem>>, vector<1x128xf32>,
    } else {
    }
    return
  }
  func.func @transform_0(%arg0: i32, %arg1: i32) -> (i32, i32) {
    %c0_i32 = arith.constant 0 : i32
    return %arg1, %arg0 : i32, i32
  }
  func.func @transform_1(%arg0: i32, %arg1: i32) -> (i32, i32) {
    %c0_i32 = arith.constant 0 : i32
    %c0_i32_0 = arith.constant 0 : i32
    return %c0_i32, %arg0 : i32, i32
  }
}

</mosaic_0001>

<bundles_post_ra>
// kernel: tpu_custom_call.1
= control target key start
LH: loop header
LB: loop body
LE: loop exit
PB: predicated region body
PF: predicated region fallthrough
CT: control target
= control target key end

     0   :  { %6 = vsyncpa [#allocation4], 0  ;;  %s144_s0 = inlined_call_operand.hbm [shape: f32[8,128], index: 0, kind: input, shape index: {}]   ;;  %s145_s1 = inlined_call_operand.hbm [shape: f32[1,128], index: 1, kind: output, shape index: {}]  }
   0x1   :  { %7 = vsyncpa [#allocation5], 0  ;;  %s107_s6 = smov [#allocation3]   ;;  %s59_s10 = scalar_lea.hbm %s144_s0, 128 }
   0x2   :  { %s14_s7 = sshll.u32 %s107_s6, 4  ;;  %p60_p0 = scmp.ne.s32.totalorder %s144_s0, %s59_s10  ;;  %s15_s7 = int_to_ptr.vmem [resolvable:$true] %s14_s7 }
   0x3   :  { %p63_p1 = scmp.lt.u32.totalorder %s59_s10, %s144_s0 }
   0x5   :  { %p65_p2 = pnand %p63_p1, %p60_p0 }
   0x7   :  { %68 = shalt.err (!%p65_p2)
}
   0x8   :  { %s69_s15 = scalar_lea.vmem %s15_s7, 128  ;;  %p74_p4 = scmp.lt.s32.totalorder %s15_s7, %s15_s7 }
   0x9   :  { %p70_p3 = scmp.ne.s32.totalorder %s15_s7, %s69_s15  ;;  %p75_p5 = scmp.lt.s32.totalorder %s69_s15, %s69_s15 }
   0xb   :  { %p76_p6 = por %p75_p5, %p74_p4 }
   0xd   :  { %p77_p7 = pnand %p76_p6, %p70_p3 }
   0xf   :  { %80 = shalt.err (!%p77_p7)
}
  0x10   :  { %17 = dma.hbm_to_vmem [thread:$0]  %s144_s0, 128, %s15_s7, [#allocation4]  }
  0x11   :  { %103 = dma.done.wait [#allocation4], 128  }
  0x12   :  { %104 = vsyncadd [#allocation4], 4294967168  ;;  %v108_v0 = vmov 0.0   ;;  %v27_v1 = vld [vmem:[#allocation3] sm:$0xff]  ;;  %s109_s18 = smov [#allocation6]  }
  0x13   :  { %25 = vst [vmem:[#allocation2] sm:$0x1] %v108_v0  ;;  %v28_v2 = vrot.slane %v27_v1, 4  ;;  %s47_s19 = sshll.u32 %s109_s18, 4  ;;  %s48_s19 = int_to_ptr.vmem [resolvable:$true] %s47_s19 }
  0x14   :  { %s81_s0 = scalar_lea.vmem %s48_s19, 16  ;;  %s85_s20 = scalar_lea.vmem %s48_s19, 32 }
  0x15   :  { %v29_v3 = vadd.f32 %v28_v2, %v27_v1  ;;  %p82_p8 = scmp.ne.s32.totalorder %s48_s19, %s81_s0  ;;  %p86_p9 = scmp.lt.s32.totalorder %s48_s19, %s48_s19 }
  0x16   :  { %p87_p10 = scmp.lt.s32.totalorder %s85_s20, %s81_s0 }
  0x17   :  { %v30_v4 = vrot.slane %v29_v3, 2 }
  0x18   :  { %p88_p11 = por %p87_p10, %p86_p9 }
  0x19   :  { %v31_v5 = vadd.f32 %v30_v4, %v29_v3 }
  0x1a   :  { %v26_v7 = vld [vmem:[#allocation2] sm:$0x1]  ;;  %p89_p12 = pnand %p88_p11, %p82_p8 }
  0x1b   :  { %v32_v6 = vrot.slane %v31_v5, 1 }
  0x1d   :  { %v33_v8 = vadd.f32 %v32_v6, %v31_v5 }
  0x1f   :  { %v34_v9 = vadd.f32 %v33_v8, %v26_v7 }
  0x21   :  { %35 = vst [vmem:[#allocation2] sm:$0x1] %v34_v9 }
  0x28   :  { %v39_v10 = vld [vmem:[#allocation2] sm:$0x1] }
  0x29   :  { %40 = vst [vmem:[#allocation6] sm:$0x1] %v39_v10 }
  0x2a   :  { %92 = shalt.err (!%p89_p12)
}
  0x2b   :  { %s93_s23 = scalar_lea.hbm %s145_s1, 16 }
  0x2c   :  { %p94_p13 = scmp.ne.s32.totalorder %s145_s1, %s93_s23  ;;  %p97_p0 = scmp.lt.u32.totalorder %s93_s23, %s145_s1 }
  0x2e   :  { %p99_p1 = pnand %p97_p0, %p94_p13 }
  0x30   :  { %102 = shalt.err (!%p99_p1)
}
  0x31   :  { %50 = dma.vmem_to_hbm [thread:$0]  %s48_s19, 16, %s145_s1, [#allocation5]  }
  0x32   :  { %105 = dma.done.wait [#allocation5], 16  }
  0x33   :  { %106 = vsyncadd [#allocation5], 4294967280 }
  0x34   :  { %54 = vsyncpa [#allocation4], 1 }
  0x35   :  { %55 = vsyncpa [#allocation5], 1 }

</bundles_post_ra>
